<compile_context>
chip_gen: v5e
topology: v5e:2x2
jax: 0.10.0
libtpu: 0.0.40
codegen_flags: <defaults>
</compile_context>

<pallas_src>
import functools

import jax
import jax.numpy as jnp
from jax.experimental import pallas as pl
from jax.experimental.pallas import tpu as pltpu


def _round_up(v, m):
    return -(-v // m) * m


def _block_kernel(x_ref, xh_ref, w1_ref, b1_ref, w2_ref, b2_ref, out_ref,
                  rz_ref, col_ref, *, Hb, W, pad):
    # x_ref   : (1, Cin, Hb*W)      f32   one spatial band, pixels on lanes
    # xh_ref  : (1, 1, Cin, 2*W)    f32   the two halo input rows (top | bottom) of this band
    # w1_ref  : (Cm, Cin)           bf16  1x1 conv weights (Cm = padded mid channels)
    # b1_ref  : (Cm, 1)             f32
    # w2_ref  : (Cout, 9*Cm)        bf16  3x3 conv weights, tap-major / channel-minor
    # b2_ref  : (Cout, 1)           f32
    # out_ref : (1, Cout, Hb*W)     f32   lane-dense output band
    # rz_ref  : VMEM (Cm, pad + (Hb+1)*W + pad) bf16  flat relu(conv1) band incl. halo rows
    # col_ref : VMEM (9*Cm, Hb*W)   bf16  im2col buffer for the 3x3 conv
    HbW = Hb * W
    Cm = w1_ref.shape[0]
    band = pl.program_id(1)
    nb = pl.num_programs(1)

    # Hygiene: zero the outer pad regions once.  They are only ever read at positions that
    # the kw column masks zero out anyway, so this is not required for correctness.
    @pl.when((pl.program_id(0) == 0) & (band == 0))
    def _():
        rz_ref[:, : pad - W] = jnp.zeros((Cm, pad - W), rz_ref.dtype)
        tail = rz_ref.shape[1] - (pad + (Hb + 1) * W)
        rz_ref[:, pad + (Hb + 1) * W:] = jnp.zeros((Cm, tail), rz_ref.dtype)

    # ---- conv1 (1x1) on the main band: one bf16 MXU GEMM, f32 accumulate, bias, ReLU ----
    x = x_ref[0].astype(jnp.bfloat16)                                    # (Cin, HbW)
    y1 = jnp.dot(w1_ref[...], x, preferred_element_type=jnp.float32)     # (Cm, HbW)
    r = jnp.maximum(y1 + b1_ref[...], 0.0)
    rz_ref[:, pad:pad + HbW] = r.astype(rz_ref.dtype)                    # lane-aligned store

    # ---- conv1 on the two halo rows (image rows band*Hb-1 and band*Hb+Hb) ----
    xh = xh_ref[0, 0].astype(jnp.bfloat16)                               # (Cin, 2W)
    yh = jnp.maximum(
        jnp.dot(w1_ref[...], xh, preferred_element_type=jnp.float32) + b1_ref[...],
        0.0).astype(rz_ref.dtype)                                        # (Cm, 2W)
    rz_ref[:, pad - W:pad] = yh[:, :W]                # top halo row
    rz_ref[:, pad + HbW:pad + HbW + W] = yh[:, W:]    # bottom halo row

    # The 3x3 conv zero-pads the *activation* map: out-of-image halo rows must be zero.
    @pl.when(band == 0)
    def _():
        rz_ref[:, pad - W:pad] = jnp.zeros((Cm, W), rz_ref.dtype)

    @pl.when(band == nb - 1)
    def _():
        rz_ref[:, pad + HbW:pad + HbW + W] = jnp.zeros((Cm, W), rz_ref.dtype)

    # ---- build the (9*Cm, HbW) bf16 im2col: flat-pixel shifts + column-validity masks ----
    jcol = jax.lax.broadcasted_iota(jnp.int32, (Cm, HbW), 1) % W   # dest column j
    left_ok = jcol >= 1                                            # valid when dw == -1
    right_ok = jcol <= W - 2                                       # valid when dw == +1
    for kh in range(3):
        for kw in range(3):
            t = kh * 3 + kw
            start = pad + (kh - 1) * W + (kw - 1)
            tap = rz_ref[:, start:start + HbW]                     # (Cm, HbW) bf16
            if kw == 0:
                tap = jnp.where(left_ok, tap, 0.0)
            elif kw == 2:
                tap = jnp.where(right_ok, tap, 0.0)
            col_ref[t * Cm:(t + 1) * Cm, :] = tap                  # (16,128)-aligned store

    # ---- conv2 (3x3) as one big-K bf16 GEMM + bias + ReLU ----
    y2 = jnp.dot(w2_ref[...], col_ref[...], preferred_element_type=jnp.float32)
    out_ref[0] = jnp.maximum(y2 + b2_ref[...], 0.0).astype(out_ref.dtype)


def _pick_band_rows(H, W, Cin, Cm, Cout, requested):
    """Pick Hb rows per band: Hb | H and (Hb*W % 128 == 0 or Hb == H)."""
    def ok(h):
        return H % h == 0 and (h == H or (h * W) % 128 == 0)

    if requested is not None:
        if not ok(requested):
            raise ValueError(f"band_rows={requested} must divide H={H} and give a "
                             f"128-multiple band width (band_rows*W) or equal H")
        return requested
    budget = 12 << 20   # target VMEM-resident per-band state (bytes)
    per_row = W * (9 * Cm * 2 + Cm * 2 + 2 * Cin * 4 + 2 * Cout * 4)
    hb_max = max(1, min(H, budget // max(per_row, 1)))
    for h in range(hb_max, 0, -1):
        if ok(h):
            return h
    return H   # fallback: single band (may need a big vmem limit for huge images)


def block_pallas(x_nchw, w1, b1, w2, b2, band_rows=None):
    """Block forward: relu(conv3x3_pad1(relu(conv1x1(x)))).

    x_nchw: (N, dim, H, W); w1: (dim, dim, 1, 1); b1: (dim,);
    w2: (dim_out, dim, 3, 3); b2: (dim_out,).  Returns (N, dim_out, H, W) f32.
    """
    N, Cin, H, W = x_nchw.shape
    Cmid = w1.shape[0]
    Cout = w2.shape[0]
    HW = H * W

    # Pad mid channels to a multiple of 16 so the bf16 per-tap stores are tile-aligned.
    Cm = max(16, _round_up(Cmid, 16))

    Hb = _pick_band_rows(H, W, Cin, Cm, Cout, band_rows)
    nb = H // Hb
    HbW = Hb * W
    pad = max(128, _round_up(W + 1, 128))         # lane-aligned left pad of the rz scratch
    rz_len = pad + (Hb + 1) * W + pad

    # NCHW -> (N, C, H*W): a free reshape; pixels stay on lanes, no transposes / jnp.pad.
    x_mat = x_nchw.reshape(N, Cin, HW).astype(jnp.float32)

    # Per-band halo input rows: image rows band*Hb-1 and (band+1)*Hb.  Out-of-image rows
    # are dummies (zeros) — the kernel zeroes the corresponding *activation* rows instead
    # (conv1(0)+bias would not be zero, so zero-x is not a substitute).
    x4 = x_nchw.astype(jnp.float32)
    zrow = jnp.zeros((N, Cin, 1, W), jnp.float32)
    if nb > 1:
        tops = jnp.concatenate([zrow, x4[:, :, Hb - 1:H - 1:Hb, :]], axis=2)  # (N,Cin,nb,W)
        bots = jnp.concatenate([x4[:, :, Hb:H:Hb, :], zrow], axis=2)          # (N,Cin,nb,W)
    else:
        tops, bots = zrow, zrow
    xhalo = jnp.stack([tops, bots], axis=3)                     # (N, Cin, nb, 2, W)
    xhalo = jnp.transpose(xhalo, (0, 2, 1, 3, 4)).reshape(N, nb, Cin, 2 * W)

    # Weights as bf16 matmul operands (biases stay f32 for the epilogue), mid-padded.
    w1_mat = jnp.zeros((Cm, Cin), jnp.bfloat16).at[:Cmid, :].set(
        w1.reshape(Cmid, Cin).astype(jnp.bfloat16))
    b1_mat = jnp.zeros((Cm, 1), jnp.float32).at[:Cmid, 0].set(b1.astype(jnp.float32))
    # OIHW -> (Cout, kh, kw, Cm) -> (Cout, 9*Cm): tap-major, channel-minor (matches col_ref).
    w2_t = jnp.transpose(w2, (0, 2, 3, 1)).astype(jnp.bfloat16)          # (Cout,3,3,Cmid)
    w2_pad = jnp.zeros((Cout, 3, 3, Cm), jnp.bfloat16).at[:, :, :, :Cmid].set(w2_t)
    w2_mat = w2_pad.reshape(Cout, 9 * Cm)
    b2_mat = b2.reshape(Cout, 1).astype(jnp.float32)

    # VMEM budget: scratch + double-buffered in/out blocks, with headroom.
    vmem_bytes = (
        2 * Cin * HbW * 4                       # x band (double buffered)
        + 2 * Cin * 2 * W * 4                   # halo block
        + 2 * (Cm * Cin * 2 + Cm * 4 + Cout * 9 * Cm * 2 + Cout * 4)   # weights/biases
        + 2 * Cout * HbW * 4                    # output band
        + Cm * rz_len * 2                       # rz scratch (bf16)
        + 9 * Cm * HbW * 2)                     # col scratch (bf16)
    vmem_limit = min(max(32 << 20, int(vmem_bytes * 1.5) + (4 << 20)), 96 << 20)

    kernel = functools.partial(_block_kernel, Hb=Hb, W=W, pad=pad)

    out = pl.pallas_call(
        kernel,
        out_shape=jax.ShapeDtypeStruct((N, Cout, HW), jnp.float32),
        grid_spec=pltpu.PrefetchScalarGridSpec(
            num_scalar_prefetch=0,
            grid=(N, nb),
            in_specs=[
                pl.BlockSpec((1, Cin, HbW), lambda n, b: (n, 0, b)),
                pl.BlockSpec((1, 1, Cin, 2 * W), lambda n, b: (n, b, 0, 0)),
                pl.BlockSpec((Cm, Cin), lambda n, b: (0, 0)),
                pl.BlockSpec((Cm, 1), lambda n, b: (0, 0)),
                pl.BlockSpec((Cout, 9 * Cm), lambda n, b: (0, 0)),
                pl.BlockSpec((Cout, 1), lambda n, b: (0, 0)),
            ],
            out_specs=pl.BlockSpec((1, Cout, HbW), lambda n, b: (n, 0, b)),
            scratch_shapes=[
                pltpu.VMEM((Cm, rz_len), jnp.bfloat16),
                pltpu.VMEM((9 * Cm, HbW), jnp.bfloat16),
            ],
        ),
        compiler_params=pltpu.CompilerParams(
            dimension_semantics=("parallel", "parallel"),
            vmem_limit_bytes=vmem_limit),
    )(x_mat, xhalo, w1_mat, b1_mat, w2_mat, b2_mat)

    # (N, Cout, H*W) is already NCHW-flat; just restore the spatial dims.
    return out.reshape(N, Cout, H, W)


def _reference(x, w1, b1, w2, b2):
    """Plain-JAX reference with the same NCHW semantics as the PyTorch module."""
    dn1 = jax.lax.conv_dimension_numbers(x.shape, w1.shape, ("NCHW", "OIHW", "NCHW"))
    y1 = jax.lax.conv_general_dilated(x, w1, (1, 1), ((0, 0), (0, 0)),
                                      dimension_numbers=dn1) + b1.reshape(1, -1, 1, 1)
    r = jnp.maximum(y1, 0.0)
    dn2 = jax.lax.conv_dimension_numbers(r.shape, w2.shape, ("NCHW", "OIHW", "NCHW"))
    y2 = jax.lax.conv_general_dilated(r, w2, (1, 1), ((1, 1), (1, 1)),
                                      dimension_numbers=dn2) + b2.reshape(1, -1, 1, 1)
    return jnp.maximum(y2, 0.0)


if __name__ == "__main__":
    key = jax.random.PRNGKey(0)
    N, dim, dim_out, H, W = 2, 4, 8, 16, 16

    k1, k2, k3, k4, k5 = jax.random.split(key, 5)
    x = jax.random.normal(k1, (N, dim, H, W), jnp.float32)
    # Synthetic parameters with the nn.Conv2d shapes used by the module.
    w1 = jax.random.normal(k2, (dim, dim, 1, 1), jnp.float32) * 0.2
    b1 = jax.random.normal(k3, (dim,), jnp.float32) * 0.1
    w2 = jax.random.normal(k4, (dim_out, dim, 3, 3), jnp.float32) * 0.1
    b2 = jax.random.normal(k5, (dim_out,), jnp.float32) * 0.1

    ref = _reference(x, w1, b1, w2, b2)

    # Single-band path (whole image per grid step).
    out_single = jax.block_until_ready(block_pallas(x, w1, b1, w2, b2))
    # Multi-band path (2 bands of 8 rows) — exercises the halo exchange + boundary zeroing.
    out_banded = jax.block_until_ready(block_pallas(x, w1, b1, w2, b2, band_rows=8))

    for out in (out_single, out_banded):
        assert out.shape == (N, dim_out, H, W)
        err = float(jnp.max(jnp.abs(out - ref)))
        assert jnp.allclose(out, ref, atol=2e-2, rtol=2e-2), (
            f"mismatch vs reference: max abs err = {err}")

    print("KERNEL_OK")
</pallas_src>

<mosaic_0001>
module attributes {stable_mosaic.version = 11 : i64} {
  func.func @_block_kernel(%arg0: i32, %arg1: i32, %arg2: memref<1x4x256xf32, #tpu.memory_space<vmem>>, %arg3: memref<1x1x4x32xf32, #tpu.memory_space<vmem>>, %arg4: memref<16x4xbf16, #tpu.memory_space<vmem>>, %arg5: memref<16x1xf32, #tpu.memory_space<vmem>>, %arg6: memref<8x144xbf16, #tpu.memory_space<vmem>>, %arg7: memref<8x1xf32, #tpu.memory_space<vmem>>, %arg8: memref<1x8x256xf32, #tpu.memory_space<vmem>>, %arg9: memref<16x528xbf16, #tpu.memory_space<vmem>>, %arg10: memref<144x256xbf16, #tpu.memory_space<vmem>>) attributes {dimension_semantics = [#tpu.dimension_semantics<parallel>, #tpu.dimension_semantics<parallel>], iteration_bounds = array<i64: 2, 1>, scalar_prefetch = 0 : i64, scratch_operands = 2 : i64, tpu.core_type = #tpu.core_type<tc>, window_params = [{transform_indices = @transform_0, window_bounds = array<i64: 1, 4, 256>}, {transform_indices = @transform_1, window_bounds = array<i64: 1, 1, 4, 32>}, {pipeline_mode = #tpu.pipeline_mode<synchronous>, transform_indices = @transform_2, window_bounds = array<i64: 16, 4>}, {pipeline_mode = #tpu.pipeline_mode<synchronous>, transform_indices = @transform_3, window_bounds = array<i64: 16, 1>}, {pipeline_mode = #tpu.pipeline_mode<synchronous>, transform_indices = @transform_4, window_bounds = array<i64: 8, 144>}, {pipeline_mode = #tpu.pipeline_mode<synchronous>, transform_indices = @transform_5, window_bounds = array<i64: 8, 1>}, {transform_indices = @transform_6, window_bounds = array<i64: 1, 8, 256>}]} {
    %c0_i32 = arith.constant 0 : i32
    %0 = arith.cmpi eq, %arg0, %c0_i32 : i32
    %c0_i32_0 = arith.constant 0 : i32
    %1 = arith.cmpi eq, %arg1, %c0_i32_0 : i32
    %2 = arith.andi %0, %1 : i1
    %3 = arith.extui %2 : i1 to i32
    %c0_i32_1 = arith.constant 0 : i32
    %4 = arith.cmpi ne, %3, %c0_i32_1 : i32
    scf.if %4 {
      %cst_71 = arith.constant 0.000000e+00 : bf16
      %106 = vector.broadcast %cst_71 : bf16 to vector<16x112xbf16>
      %c0_72 = arith.constant 0 : index
      %c0_73 = arith.constant 0 : index
      %107 = vector.load %arg9[%c0_72, %c0_73] : memref<16x528xbf16, #tpu.memory_space<vmem>>, vector<16x112xbf16>
      tpu.vector_store %arg9[%c0_72, %c0_73], %106 {strides = array<i32>} : memref<16x528xbf16, #tpu.memory_space<vmem>>, vector<16x112xbf16>,
      %cst_74 = arith.constant 0.000000e+00 : bf16
      %108 = vector.broadcast %cst_74 : bf16 to vector<16x128xbf16>
      %c0_75 = arith.constant 0 : index
      %c400 = arith.constant 400 : index
      %109 = vector.load %arg9[%c0_75, %c400] : memref<16x528xbf16, #tpu.memory_space<vmem>>, vector<16x128xbf16>
      tpu.vector_store %arg9[%c0_75, %c400], %108 {strides = array<i32>} : memref<16x528xbf16, #tpu.memory_space<vmem>>, vector<16x128xbf16>,
    } else {
    }
    %c0 = arith.constant 0 : index
    %c0_2 = arith.constant 0 : index
    %c0_3 = arith.constant 0 : index
    %5 = vector.load %arg2[%c0, %c0_2, %c0_3] : memref<1x4x256xf32, #tpu.memory_space<vmem>>, vector<1x4x256xf32>
    %6 = vector.shape_cast %5 : vector<1x4x256xf32> to vector<4x256xf32>
    %7 = arith.truncf %6 : vector<4x256xf32> to vector<4x256xbf16>
    %c0_4 = arith.constant 0 : index
    %c0_5 = arith.constant 0 : index
    %8 = vector.load %arg4[%c0_4, %c0_5] : memref<16x4xbf16, #tpu.memory_space<vmem>>, vector<16x4xbf16>
    %cst = arith.constant dense<0.000000e+00> : vector<16x256xf32>
    %9 = tpu.matmul %8, %7, %cst {dimension_numbers = #tpu.dot_dimension_numbers<[1], [0], [0], [1], [0, 0, 1, 1], [], []>} : vector<16x4xbf16>, vector<4x256xbf16>, vector<16x256xf32> -> vector<16x256xf32>
    %c0_6 = arith.constant 0 : index
    %c0_7 = arith.constant 0 : index
    %10 = vector.load %arg5[%c0_6, %c0_7] : memref<16x1xf32, #tpu.memory_space<vmem>>, vector<16x1xf32>
    %11 = vector.broadcast %10 : vector<16x1xf32> to vector<16x256xf32>
    %12 = arith.addf %9, %11 : vector<16x256xf32>
    %cst_8 = arith.constant 0.000000e+00 : f32
    %13 = vector.broadcast %cst_8 : f32 to vector<16x256xf32>
    %14 = arith.maximumf %12, %13 : vector<16x256xf32>
    %15 = arith.truncf %14 : vector<16x256xf32> to vector<16x256xbf16>
    %c0_9 = arith.constant 0 : index
    %c128 = arith.constant 128 : index
    %16 = vector.load %arg9[%c0_9, %c128] : memref<16x528xbf16, #tpu.memory_space<vmem>>, vector<16x256xbf16>
    tpu.vector_store %arg9[%c0_9, %c128], %15 {strides = array<i32>} : memref<16x528xbf16, #tpu.memory_space<vmem>>, vector<16x256xbf16>,
    %c0_10 = arith.constant 0 : index
    %c0_11 = arith.constant 0 : index
    %c0_12 = arith.constant 0 : index
    %c0_13 = arith.constant 0 : index
    %17 = vector.load %arg3[%c0_10, %c0_11, %c0_12, %c0_13] : memref<1x1x4x32xf32, #tpu.memory_space<vmem>>, vector<1x1x4x32xf32>
    %18 = vector.shape_cast %17 : vector<1x1x4x32xf32> to vector<4x32xf32>
    %19 = arith.truncf %18 : vector<4x32xf32> to vector<4x32xbf16>
    %c0_14 = arith.constant 0 : index
    %c0_15 = arith.constant 0 : index
    %20 = vector.load %arg4[%c0_14, %c0_15] : memref<16x4xbf16, #tpu.memory_space<vmem>>, vector<16x4xbf16>
    %cst_16 = arith.constant dense<0.000000e+00> : vector<16x32xf32>
    %21 = tpu.matmul %20, %19, %cst_16 {dimension_numbers = #tpu.dot_dimension_numbers<[1], [0], [0], [1], [0, 0, 1, 1], [], []>} : vector<16x4xbf16>, vector<4x32xbf16>, vector<16x32xf32> -> vector<16x32xf32>
    %c0_17 = arith.constant 0 : index
    %c0_18 = arith.constant 0 : index
    %22 = vector.load %arg5[%c0_17, %c0_18] : memref<16x1xf32, #tpu.memory_space<vmem>>, vector<16x1xf32>
    %23 = vector.broadcast %22 : vector<16x1xf32> to vector<16x32xf32>
    %24 = arith.addf %21, %23 : vector<16x32xf32>
    %cst_19 = arith.constant 0.000000e+00 : f32
    %25 = vector.broadcast %cst_19 : f32 to vector<16x32xf32>
    %26 = arith.maximumf %24, %25 : vector<16x32xf32>
    %27 = arith.truncf %26 : vector<16x32xf32> to vector<16x32xbf16>
    %28 = vector.extract_strided_slice %27 {offsets = [0, 0], sizes = [16, 16], strides = [1, 1]} : vector<16x32xbf16> to vector<16x16xbf16>
    %c0_20 = arith.constant 0 : index
    %c112 = arith.constant 112 : index
    %29 = vector.load %arg9[%c0_20, %c112] : memref<16x528xbf16, #tpu.memory_space<vmem>>, vector<16x16xbf16>
    tpu.vector_store %arg9[%c0_20, %c112], %28 {strides = array<i32>} : memref<16x528xbf16, #tpu.memory_space<vmem>>, vector<16x16xbf16>,
    %30 = vector.extract_strided_slice %27 {offsets = [0, 16], sizes = [16, 16], strides = [1, 1]} : vector<16x32xbf16> to vector<16x16xbf16>
    %c0_21 = arith.constant 0 : index
    %c384 = arith.constant 384 : index
    %31 = vector.load %arg9[%c0_21, %c384] : memref<16x528xbf16, #tpu.memory_space<vmem>>, vector<16x16xbf16>
    tpu.vector_store %arg9[%c0_21, %c384], %30 {strides = array<i32>} : memref<16x528xbf16, #tpu.memory_space<vmem>>, vector<16x16xbf16>,
    %c0_i32_22 = arith.constant 0 : i32
    %32 = arith.cmpi eq, %arg1, %c0_i32_22 : i32
    %33 = arith.extui %32 : i1 to i32
    %c0_i32_23 = arith.constant 0 : i32
    %34 = arith.cmpi ne, %33, %c0_i32_23 : i32
    scf.if %34 {
      %cst_71 = arith.constant 0.000000e+00 : bf16
      %106 = vector.broadcast %cst_71 : bf16 to vector<16x16xbf16>
      %c0_72 = arith.constant 0 : index
      %c112_73 = arith.constant 112 : index
      %107 = vector.load %arg9[%c0_72, %c112_73] : memref<16x528xbf16, #tpu.memory_space<vmem>>, vector<16x16xbf16>
      tpu.vector_store %arg9[%c0_72, %c112_73], %106 {strides = array<i32>} : memref<16x528xbf16, #tpu.memory_space<vmem>>, vector<16x16xbf16>,
    } else {
    }
    %c0_i32_24 = arith.constant 0 : i32
    %35 = arith.cmpi eq, %arg1, %c0_i32_24 : i32
    %36 = arith.extui %35 : i1 to i32
    %c0_i32_25 = arith.constant 0 : i32
    %37 = arith.cmpi ne, %36, %c0_i32_25 : i32
    scf.if %37 {
      %cst_71 = arith.constant 0.000000e+00 : bf16
      %106 = vector.broadcast %cst_71 : bf16 to vector<16x16xbf16>
      %c0_72 = arith.constant 0 : index
      %c384_73 = arith.constant 384 : index
      %107 = vector.load %arg9[%c0_72, %c384_73] : memref<16x528xbf16, #tpu.memory_space<vmem>>, vector<16x16xbf16>
      tpu.vector_store %arg9[%c0_72, %c384_73], %106 {strides = array<i32>} : memref<16x528xbf16, #tpu.memory_space<vmem>>, vector<16x16xbf16>,
    } else {
    }
    %38 = tpu.iota {dimensions = array<i32: 1>} : vector<16x256xi32>
    %c16_i32 = arith.constant 16 : i32
    %c0_i32_26 = arith.constant 0 : i32
    %39 = arith.cmpi eq, %c16_i32, %c0_i32_26 : i32
    %c1_i32 = arith.constant 1 : i32
    %40 = arith.select %39, %c1_i32, %c16_i32 : i32
    %41 = vector.broadcast %40 : i32 to vector<16x256xi32>
    %42 = arith.remsi %38, %41 : vector<16x256xi32>
    %c0_i32_27 = arith.constant 0 : i32
    %43 = vector.broadcast %c0_i32_27 : i32 to vector<16x256xi32>
    %44 = arith.cmpi ne, %42, %43 : vector<16x256xi32>
    %c0_i32_28 = arith.constant 0 : i32
    %45 = vector.broadcast %c0_i32_28 : i32 to vector<16x256xi32>
    %46 = arith.cmpi slt, %42, %45 : vector<16x256xi32>
    %c0_i32_29 = arith.constant 0 : i32
    %47 = arith.cmpi slt, %40, %c0_i32_29 : i32
    %48 = vector.broadcast %47 : i1 to vector<16x256xi1>
    %49 = vector.broadcast %48 : vector<16x256xi1> to vector<16x256xi1>
    %50 = arith.xori %46, %49 : vector<16x256xi1>
    %51 = arith.andi %50, %44 : vector<16x256xi1>
    %52 = vector.broadcast %40 : i32 to vector<16x256xi32>
    %53 = arith.addi %42, %52 : vector<16x256xi32>
    %54 = arith.select %51, %53, %42 : vector<16x256xi1>, vector<16x256xi32>
    %c1_i32_30 = arith.constant 1 : i32
    %55 = vector.broadcast %c1_i32_30 : i32 to vector<16x256xi32>
    %56 = arith.cmpi sge, %54, %55 : vector<16x256xi32>
    %c14_i32 = arith.constant 14 : i32
    %57 = vector.broadcast %c14_i32 : i32 to vector<16x256xi32>
    %58 = arith.cmpi sle, %54, %57 : vector<16x256xi32>
    %c0_31 = arith.constant 0 : index
    %c111 = arith.constant 111 : index
    %59 = vector.load %arg9[%c0_31, %c111] : memref<16x528xbf16, #tpu.memory_space<vmem>>, vector<16x256xbf16>
    %cst_32 = arith.constant 0.000000e+00 : f32
    %60 = arith.truncf %cst_32 : f32 to bf16
    %61 = vector.broadcast %60 : bf16 to vector<16x256xbf16>
    %62 = arith.select %56, %59, %61 : vector<16x256xi1>, vector<16x256xbf16>
    %c0_33 = arith.constant 0 : index
    %c0_34 = arith.constant 0 : index
    %63 = vector.load %arg10[%c0_33, %c0_34] : memref<144x256xbf16, #tpu.memory_space<vmem>>, vector<16x256xbf16>
    tpu.vector_store %arg10[%c0_33, %c0_34], %62 {strides = array<i32>} : memref<144x256xbf16, #tpu.memory_space<vmem>>, vector<16x256xbf16>,
    %c0_35 = arith.constant 0 : index
    %c112_36 = arith.constant 112 : index
    %64 = vector.load %arg9[%c0_35, %c112_36] : memref<16x528xbf16, #tpu.memory_space<vmem>>, vector<16x256xbf16>
    %c16 = arith.constant 16 : index
    %c0_37 = arith.constant 0 : index
    %65 = vector.load %arg10[%c16, %c0_37] : memref<144x256xbf16, #tpu.memory_space<vmem>>, vector<16x256xbf16>
    tpu.vector_store %arg10[%c16, %c0_37], %64 {strides = array<i32>} : memref<144x256xbf16, #tpu.memory_space<vmem>>, vector<16x256xbf16>,
    %c0_38 = arith.constant 0 : index
    %c113 = arith.constant 113 : index
    %66 = vector.load %arg9[%c0_38, %c113] : memref<16x528xbf16, #tpu.memory_space<vmem>>, vector<16x256xbf16>
    %cst_39 = arith.constant 0.000000e+00 : f32
    %67 = arith.truncf %cst_39 : f32 to bf16
    %68 = vector.broadcast %67 : bf16 to vector<16x256xbf16>
    %69 = arith.select %58, %66, %68 : vector<16x256xi1>, vector<16x256xbf16>
    %c32 = arith.constant 32 : index
    %c0_40 = arith.constant 0 : index
    %70 = vector.load %arg10[%c32, %c0_40] : memref<144x256xbf16, #tpu.memory_space<vmem>>, vector<16x256xbf16>
    tpu.vector_store %arg10[%c32, %c0_40], %69 {strides = array<i32>} : memref<144x256xbf16, #tpu.memory_space<vmem>>, vector<16x256xbf16>,
    %c0_41 = arith.constant 0 : index
    %c127 = arith.constant 127 : index
    %71 = vector.load %arg9[%c0_41, %c127] : memref<16x528xbf16, #tpu.memory_space<vmem>>, vector<16x256xbf16>
    %cst_42 = arith.constant 0.000000e+00 : f32
    %72 = arith.truncf %cst_42 : f32 to bf16
    %73 = vector.broadcast %72 : bf16 to vector<16x256xbf16>
    %74 = arith.select %56, %71, %73 : vector<16x256xi1>, vector<16x256xbf16>
    %c48 = arith.constant 48 : index
    %c0_43 = arith.constant 0 : index
    %75 = vector.load %arg10[%c48, %c0_43] : memref<144x256xbf16, #tpu.memory_space<vmem>>, vector<16x256xbf16>
    tpu.vector_store %arg10[%c48, %c0_43], %74 {strides = array<i32>} : memref<144x256xbf16, #tpu.memory_space<vmem>>, vector<16x256xbf16>,
    %c0_44 = arith.constant 0 : index
    %c128_45 = arith.constant 128 : index
    %76 = vector.load %arg9[%c0_44, %c128_45] : memref<16x528xbf16, #tpu.memory_space<vmem>>, vector<16x256xbf16>
    %c64 = arith.constant 64 : index
    %c0_46 = arith.constant 0 : index
    %77 = vector.load %arg10[%c64, %c0_46] : memref<144x256xbf16, #tpu.memory_space<vmem>>, vector<16x256xbf16>
    tpu.vector_store %arg10[%c64, %c0_46], %76 {strides = array<i32>} : memref<144x256xbf16, #tpu.memory_space<vmem>>, vector<16x256xbf16>,
    %c0_47 = arith.constant 0 : index
    %c129 = arith.constant 129 : index
    %78 = vector.load %arg9[%c0_47, %c129] : memref<16x528xbf16, #tpu.memory_space<vmem>>, vector<16x256xbf16>
    %cst_48 = arith.constant 0.000000e+00 : f32
    %79 = arith.truncf %cst_48 : f32 to bf16
    %80 = vector.broadcast %79 : bf16 to vector<16x256xbf16>
    %81 = arith.select %58, %78, %80 : vector<16x256xi1>, vector<16x256xbf16>
    %c80 = arith.constant 80 : index
    %c0_49 = arith.constant 0 : index
    %82 = vector.load %arg10[%c80, %c0_49] : memref<144x256xbf16, #tpu.memory_space<vmem>>, vector<16x256xbf16>
    tpu.vector_store %arg10[%c80, %c0_49], %81 {strides = array<i32>} : memref<144x256xbf16, #tpu.memory_space<vmem>>, vector<16x256xbf16>,
    %c0_50 = arith.constant 0 : index
    %c143 = arith.constant 143 : index
    %83 = vector.load %arg9[%c0_50, %c143] : memref<16x528xbf16, #tpu.memory_space<vmem>>, vector<16x256xbf16>
    %cst_51 = arith.constant 0.000000e+00 : f32
    %84 = arith.truncf %cst_51 : f32 to bf16
    %85 = vector.broadcast %84 : bf16 to vector<16x256xbf16>
    %86 = arith.select %56, %83, %85 : vector<16x256xi1>, vector<16x256xbf16>
    %c96 = arith.constant 96 : index
    %c0_52 = arith.constant 0 : index
    %87 = vector.load %arg10[%c96, %c0_52] : memref<144x256xbf16, #tpu.memory_space<vmem>>, vector<16x256xbf16>
    tpu.vector_store %arg10[%c96, %c0_52], %86 {strides = array<i32>} : memref<144x256xbf16, #tpu.memory_space<vmem>>, vector<16x256xbf16>,
    %c0_53 = arith.constant 0 : index
    %c144 = arith.constant 144 : index
    %88 = vector.load %arg9[%c0_53, %c144] : memref<16x528xbf16, #tpu.memory_space<vmem>>, vector<16x256xbf16>
    %c112_54 = arith.constant 112 : index
    %c0_55 = arith.constant 0 : index
    %89 = vector.load %arg10[%c112_54, %c0_55] : memref<144x256xbf16, #tpu.memory_space<vmem>>, vector<16x256xbf16>
    tpu.vector_store %arg10[%c112_54, %c0_55], %88 {strides = array<i32>} : memref<144x256xbf16, #tpu.memory_space<vmem>>, vector<16x256xbf16>,
    %c0_56 = arith.constant 0 : index
    %c145 = arith.constant 145 : index
    %90 = vector.load %arg9[%c0_56, %c145] : memref<16x528xbf16, #tpu.memory_space<vmem>>, vector<16x256xbf16>
    %cst_57 = arith.constant 0.000000e+00 : f32
    %91 = arith.truncf %cst_57 : f32 to bf16
    %92 = vector.broadcast %91 : bf16 to vector<16x256xbf16>
    %93 = arith.select %58, %90, %92 : vector<16x256xi1>, vector<16x256xbf16>
    %c128_58 = arith.constant 128 : index
    %c0_59 = arith.constant 0 : index
    %94 = vector.load %arg10[%c128_58, %c0_59] : memref<144x256xbf16, #tpu.memory_space<vmem>>, vector<16x256xbf16>
    tpu.vector_store %arg10[%c128_58, %c0_59], %93 {strides = array<i32>} : memref<144x256xbf16, #tpu.memory_space<vmem>>, vector<16x256xbf16>,
    %c0_60 = arith.constant 0 : index
    %c0_61 = arith.constant 0 : index
    %95 = vector.load %arg6[%c0_60, %c0_61] : memref<8x144xbf16, #tpu.memory_space<vmem>>, vector<8x144xbf16>
    %c0_62 = arith.constant 0 : index
    %c0_63 = arith.constant 0 : index
    %96 = vector.load %arg10[%c0_62, %c0_63] : memref<144x256xbf16, #tpu.memory_space<vmem>>, vector<144x256xbf16>
    %cst_64 = arith.constant dense<0.000000e+00> : vector<8x256xf32>
    %97 = tpu.matmul %95, %96, %cst_64 {dimension_numbers = #tpu.dot_dimension_numbers<[1], [0], [0], [1], [0, 0, 1, 1], [], []>} : vector<8x144xbf16>, vector<144x256xbf16>, vector<8x256xf32> -> vector<8x256xf32>
    %c0_65 = arith.constant 0 : index
    %c0_66 = arith.constant 0 : index
    %98 = vector.load %arg7[%c0_65, %c0_66] : memref<8x1xf32, #tpu.memory_space<vmem>>, vector<8x1xf32>
    %99 = vector.broadcast %98 : vector<8x1xf32> to vector<8x256xf32>
    %100 = arith.addf %97, %99 : vector<8x256xf32>
    %cst_67 = arith.constant 0.000000e+00 : f32
    %101 = vector.broadcast %cst_67 : f32 to vector<8x256xf32>
    %102 = arith.maximumf %100, %101 : vector<8x256xf32>
    %c0_68 = arith.constant 0 : index
    %c0_69 = arith.constant 0 : index
    %c0_70 = arith.constant 0 : index
    %103 = vector.load %arg8[%c0_68, %c0_69, %c0_70] : memref<1x8x256xf32, #tpu.memory_space<vmem>>, vector<1x8x256xf32>
    %104 = vector.shape_cast %103 : vector<1x8x256xf32> to vector<8x256xf32>
    %105 = vector.shape_cast %102 : vector<8x256xf32> to vector<1x8x256xf32>
    tpu.vector_store %arg8[%c0_68, %c0_69, %c0_70], %105 {strides = array<i32>} : memref<1x8x256xf32, #tpu.memory_space<vmem>>, vector<1x8x256xf32>,
    return
  }
  func.func @transform_0(%arg0: i32, %arg1: i32) -> (i32, i32, i32) {
    %c0_i32 = arith.constant 0 : i32
    %c0_i32_0 = arith.constant 0 : i32
    return %arg0, %c0_i32, %arg1 : i32, i32, i32
  }
  func.func @transform_1(%arg0: i32, %arg1: i32) -> (i32, i32, i32, i32) {
    %c0_i32 = arith.constant 0 : i32
    %c0_i32_0 = arith.constant 0 : i32
    %c0_i32_1 = arith.constant 0 : i32
    return %arg0, %arg1, %c0_i32, %c0_i32_0 : i32, i32, i32, i32
  }
  func.func @transform_2(%arg0: i32, %arg1: i32) -> (i32, i32) {
    %c0_i32 = arith.constant 0 : i32
    %c0_i32_0 = arith.constant 0 : i32
    %c0_i32_1 = arith.constant 0 : i32
    return %c0_i32, %c0_i32_0 : i32, i32
  }
  func.func @transform_3(%arg0: i32, %arg1: i32) -> (i32, i32) {
    %c0_i32 = arith.constant 0 : i32
    %c0_i32_0 = arith.constant 0 : i32
    %c0_i32_1 = arith.constant 0 : i32
    return %c0_i32, %c0_i32_0 : i32, i32
  }
  func.func @transform_4(%arg0: i32, %arg1: i32) -> (i32, i32) {
    %c0_i32 = arith.constant 0 : i32
    %c0_i32_0 = arith.constant 0 : i32
    %c0_i32_1 = arith.constant 0 : i32
    return %c0_i32, %c0_i32_0 : i32, i32
  }
  func.func @transform_5(%arg0: i32, %arg1: i32) -> (i32, i32) {
    %c0_i32 = arith.constant 0 : i32
    %c0_i32_0 = arith.constant 0 : i32
    %c0_i32_1 = arith.constant 0 : i32
    return %c0_i32, %c0_i32_0 : i32, i32
  }
  func.func @transform_6(%arg0: i32, %arg1: i32) -> (i32, i32, i32) {
    %c0_i32 = arith.constant 0 : i32
    %c0_i32_0 = arith.constant 0 : i32
    return %arg0, %c0_i32, %arg1 : i32, i32, i32
  }
}

</mosaic_0001>

<bundles_post_ra>
// kernel: tpu_custom_call.1
= control target key start
LH: loop header
LB: loop body
LE: loop exit
PB: predicated region body
PF: predicated region fallthrough
CT: control target
= control target key end

     0   :  { %11 = vsyncpa [#allocation5], 0  ;;  %s1991_s0 = inlined_call_operand.vmem [shape: f32[2,4,256], index: 0, kind: input, shape index: {}]   ;;  %s1992_s1 = inlined_call_operand.vmem [shape: f32[2,1,4,32], index: 1, kind: input, shape index: {}]   ;;  %s1993_s2 = inlined_call_operand.vmem [shape: bf16[16,4], index: 2, kind: input, shape index: {}]   ;;  %s1994_s3 = inlined_call_operand.vmem [shape: f32[16,1], index: 3, kind: input, shape index: {}]   ;;  %s1995_s4 = inlined_call_operand.vmem [shape: bf16[8,144], index: 4, kind: input, shape index: {}]   ;;  %s1996_s5 = inlined_call_operand.vmem [shape: f32[8,1], index: 5, kind: input, shape index: {}]   ;;  %s1997_s6 = inlined_call_operand.hbm [shape: f32[2,8,256], index: 6, kind: output, shape index: {}]  }
   0x1   :  { %13 = vsyncpa [#allocation5 + $0x1], 0  ;;  %s1478_s21 = smov 0   ;;  %s1480_s22 = smov 0  }
   0x2   :  { %s1482_s23 = smov 0   ;;  %s1484_s24 = smov 0  }
   0x3   :  { %s1486_s25 = smov 0   ;;  %s1488_s26 = smov 0  }
   0x4 LB: > { %s1162_s27 = sadd.s32 4294967295, %s1431_s26   ;;  %s1163_s28 = sadd.s32 4294967294, %s1431_s26   ;;  %s1431_s26 = sphi %s1488_s26, %s19_s26   ;;  %s1427_s25 = sphi %s1486_s25, %s2053_s25   ;;  %s1423_s24 = sphi %s1484_s24, %s2052_s24   ;;  %s1419_s23 = sphi %s1482_s23, %s2051_s23   ;;  %s1415_s22 = sphi %s1480_s22, %s2050_s22   ;;  %s1411_s21 = sphi %s1478_s21, %s2049_s21  }
   0x5   : > { %s31_s29 = sadd.s32 1, %s1427_s25  ;;  %s180_s30 = sadd.s32 1, %s1419_s23 }
   0x6   : > { %p33_p0 = scmp.ge.s32.totalorder %s31_s29, 2  ;;  %p190_p1 = scmp.ne.s32.totalorder %s1419_s23, %s1415_s22 }
   0x7   : > { %p191_p2 = scmp.eq.s32.totalorder %s1162_s27, 1  ;;  %p196_p3 = scmp.ne.s32.totalorder %s1415_s22, %s1411_s21 }
   0x8   : > { %s2055_s29 = smov (%p33_p0, %s31_s29), 0  ;;  %p197_p5 = scmp.eq.s32.totalorder %s1163_s28, 1 }
   0x9   : > { %p1518_p4 = por %p191_p2, %p190_p1  ;;  %s175_s8 = ssub.s32 %s1427_s25, %s2055_s29 }
   0xa   : > { %p1166_p6 = scmp.ge.s32.totalorder %s1431_s26, 1  ;;  %p178_p7 = scmp.eq.s32.totalorder %s175_s8, 0 }
   0xb   : > { %p1525_p8 = por %p197_p5, %p196_p3  ;;  %p250_p9 = scmp.lt.s32.totalorder %s1431_s26, 3 }
   0xc   : > { %s1531_s10 = scalar_select %p178_p7, %s1419_s23, %s180_s30  }
   0xd   : > { %p251_p10 = pnand %p1166_p6, %p250_p9 }
   0xe   : > { %s288_s11 = sand.u32 (!%p251_p10), 1, %s1415_s22   ;;  %p292_p11 = scmp.lt.s32.totalorder (!%p251_p10), %s1423_s24, 1 }
   0xf   : > { %254 = sbr.rel (%p251_p10) target bundleno = 597 (0x255), region = 44  ;;  %s1167_s12 = sshll.u32 (!%p251_p10), %s288_s11, 4 }
  0x10   : > { %p312_p12 = scmp.eq.s32.totalorder (!%p251_p10), %s1423_s24, 0  ;;  %s1545_s28 = scalar_lea.vmem (!%p251_p10), [#allocation4], %s1167_s12 }
  0x14   : > { %s293_s13 = scalar_select %p292_p11, %s1423_s24, 1  ;;  %vm318_vm0 = vcmask (%p312_p12), 912384   ;;  %vm321_vm1 = vcmask (%p312_p12), 1043584   ;;  %vm322_vm2 = vcmask (%p312_p12), 130052   ;;  %v1433_v0 = vmov (%p312_p12), 0  }
  0x15   : > { %317 = sbr.rel (!%p312_p12) target bundleno = 26 (0x1a), region = 48  ;;  %319 = vst.msk [vmem:[#allocation2] sm:$0xf] (%p312_p12), %vm318_vm0, %v1433_v0  ;;  %vm323_vm3 = vmor (%p312_p12), %vm322_vm2, %vm321_vm1 }
  0x16   : > { %s1262_s14 = sshll.u32 %s293_s13, 3  ;;  %s1170_s15 = sshll.u32 %s293_s13, 2  ;;  %320 = vst.msk [vmem:[#allocation2 + $0x14] sm:$0xf] (%p312_p12), %vm318_vm0, %v1433_v0 }
  0x17   : > { %s299_s18 = scalar_lea.vmem %s1991_s0, %s1262_s14  ;;  %s307_s27 = scalar_lea.vmem %s1992_s1, %s1170_s15  ;;  %324 = vst.msk [vmem:[#allocation2 + $0xc] sm:$0xff] (%p312_p12), %vm323_vm3, %v1433_v0 }
  0x18   : > { %325 = vst.msk [vmem:[#allocation2 + $0x20] sm:$0xff] (%p312_p12), %vm323_vm3, %v1433_v0 }
  0x1a PF: > { %vm358_vm4 = vcmask 1041408   ;;  %v401_v1 = vld [vmem:[%s307_s27] sm:$0xf]  ;;  %v467_v2 = vlaneseq  ;;  %v1434_v4 = vmov 0   ;;  %vm354_vm5 = vcmask 31744   ;;  %v406_v13 = vld [vmem:[%s1994_s3 + $0x8] sm:$0xff] }
  0x1b   : > { %v402_v3 = vpack.c.bf16 %v401_v1, %v401_v1  ;;  %1350 = vset.pattern.permute.xlu0 %v1434_v4  ;;  %v405_v5 = vld [vmem:[%s1994_s3] sm:$0xff]  ;;  %1351 = vset.pattern.permute.xlu1 %v1434_v4  ;;  %s1436_s19 = smov 1   ;;  %s1437_s20 = smov 15   ;;  %vm643_vm12 = vcmask 1039360   ;;  %vm1998_vm13 = vcmask 121856   ;;  %v1596_v35 = vunpack.c.l.b16 %v1434_v4 }
  0x1c   : > { %v326_v6 = vld [vmem:[%s299_s18] sm:$0xff]  ;;  %409 = vperm.xlu0 %1350, %v405_v5   ;;  %341 = vperm.xlu1 %1351, %v405_v5   ;;  %v468_v7 = vand.u32 127, %v467_v2  ;;  %s1435_s18 = smov 127   ;;  %s1438_s27 = smov 17   ;;  %v1599_v36 = vunpack.c.h.b16 %v1434_v4  ;;  %vm1999_vm14 = vcmask 7168  }
  0x1d   : > { %328 = vst [vmem:[#allocation1] ss:$2 sm:$0xff] %v326_v6  ;;  %v426_v8 = vsel %vm358_vm4, %v402_v3, 0  ;;  %v1265_v9 = vld [vmem:[%s1993_s2] sm:$0xff]  ;;  %1352 = vset.pattern.permute.xlu2 %v1434_v4  ;;  %s1439_s30 = smov 113   ;;  %s1440_s8 = smov 111  }
  0x1e   : > { %435 = vmatpush.bf16.msra.mxu2 %v426_v8  ;;  %v469_v10 = vadd.s32 128, %v468_v7  ;;  %v474_v11 = vand.u32 15, %v468_v7  ;;  %v1264_v23 = vld [vmem:[%s1993_s2] sm:$0xff]  ;;  %s1441_s12 = smov 112   ;;  %s1442_s13 = smov 16  }
  0x1f   : > { %s1373_s16 = scalar_lea.hbm %s1997_s6, 32 }
  0x20   : > { %v481_v12 = vand.u32 15, %v469_v10  ;;  %vm494_vm6 = vcmp.ge.s32.totalorder %v474_v11, 1  ;;  %vm1561_vm7 = vcmp.le.s32.totalorder %v474_v11, 14 }
  0x21   : > { %1182 = vmatmul.msk.bf16.vlgmr.msra.gmra.mxu2 %vm354_vm5, %v1265_v9 }
  0x22   : > { %vm1565_vm8 = vcmp.le.s32.totalorder %v481_v12, 14  ;;  %vm495_vm9 = vcmp.ge.s32.totalorder %v481_v12, 1 }
  0x23   : > { %vm502_vm10 = vmpackc.low %vm495_vm9, %vm494_vm6 }
  0x24   : > { %v329_v16 = vld.sshfl [vmem:[#allocation1] sm:$0xff pattern:$0x75316420]  ;;  %v330_v17 = vld.sshfl [vmem:[#allocation1 + $0x8] sm:$0xff pattern:$0x75316420]  ;;  %414 = vperm.xlu0 %1350, %v406_v13   ;;  %346 = vperm.xlu1 %1351, %v406_v13   ;;  %vm586_vm11 = vmpackc.low %vm1565_vm8, %vm1561_vm7 }
  0x25   : > { %v333_v18 = vpack.c.bf16 %v329_v16, %v329_v16  ;;  %v334_v19 = vpack.c.bf16 %v330_v17, %v330_v17  ;;  %v503_v20 = vsel %vm502_vm10, 65537, %v1434_v4  ;;  %v587_v24 = vsel %vm586_vm11, 65537, %v1434_v4 }
  0x26   : > { %640 = vrot.lane.b32.xlu2 %v503_v20, %s1435_s18  ;;  %vm454_vm11 = vcmask 1044352  }
  0x27   : > { %v360_v21 = vsel %vm358_vm4, %v333_v18, 0  ;;  %v363_v22 = vsel %vm358_vm4, %v334_v19, 0 }
  0x28   : > { %372 = vmatpush.bf16.msra.mxu0 %v360_v21  ;;  %386 = vmatpush.bf16.msra.mxu1 %v363_v22 }
  0x2b   : > { %1176 = vmatmul.msk.bf16.vlgmr.msra.gmra.mxu0 %vm354_vm5, %v1264_v23  ;;  %1177 = vmatmul.msk.bf16.vlgmr.msra.gmra.mxu1 %vm354_vm5, %v1264_v23 }
  0x2c   : > { %696 = vrot.lane.b32.xlu1 %v587_v24, %s1436_s19  ;;  %746 = vrot.lane.b32.xlu0 %v503_v20, %s1437_s20 }
  0x2e   : > { %825 = vrot.lane.b32.xlu2 %v587_v24, %s1438_s27 }
  0x34   : > { %588 = vrot.lane.b32.xlu0 %v587_v24, %s1439_s30  ;;  %504 = vrot.lane.b32.xlu1 %v503_v20, %s1440_s8 }
  0x80   : > { %v641_v29 = vpop.permute.xlu2 %640 }
  0x81   : > { %v642_v30 = vrot.slane %v641_v29, 4 }
  0x83   : > { %v1589_v32 = vsel %vm643_vm12, %v642_v30, %v641_v29  ;;  %v652_v56 = vunpack.c.l.b16 %v642_v30  ;;  %v653_v57 = vunpack.c.h.b16 %v642_v30 }
  0x84   : > { %v645_v48 = vunpack.c.l.b16 %v1589_v32  ;;  %v646_v49 = vunpack.c.h.b16 %v1589_v32 }
  0x85   : > { %vm1636_vm2 = vcmp.ne.s32.totalorder %v652_v56, %v1596_v35  ;;  %vm1641_vm3 = vcmp.ne.s32.totalorder %v653_v57, %v1599_v36 }
  0x86   : > { %vm658_vm6 = vmpackc.low %vm1641_vm3, %vm1636_vm2 }
  0x88   : > { %v1710_v29 = vpop.permute.xlu2 %825 }
  0x89   : > { %v827_v10 = vrot.slane %v1710_v29, 4 }
  0x8e   : > { %v410_v25 = vpop.permute.xlu0 %409  ;;  %v342_v26 = vpop.permute.xlu1 %341 }
  0x96   : > { %v415_v27 = vpop.permute.xlu0 %414  ;;  %v347_v28 = vpop.permute.xlu1 %346 }
  0x9e   : > { %v747_v31 = vpop.permute.xlu0 %746  ;;  %v697_v38 = vpop.permute.xlu1 %696 }
  0x9f   : > { %v1591_v33 = vrot.slane %v747_v31, 4  ;;  %v1601_v45 = vrot.slane %v697_v38, 4 }
  0xa1   : > { %v749_v34 = vsel %vm1998_vm13, %v1591_v33, %v747_v31  ;;  %v699_v53 = vsel %vm1999_vm14, %v1601_v45, %v697_v38  ;;  %v707_v31 = vunpack.c.l.b16 %v1601_v45  ;;  %vm2000_vm13 = vcmask 908288  }
  0xa2   : > { %v750_v39 = vunpack.c.l.b16 %v749_v34  ;;  %v751_v40 = vunpack.c.h.b16 %v749_v34  ;;  %v700_v59 = vunpack.c.l.b16 %v699_v53  ;;  %v701_v60 = vunpack.c.h.b16 %v699_v53 }
  0xa3   : > { %v708_v34 = vunpack.c.h.b16 %v1601_v45 }
  0xa4   : > { %v437_v37 = vpop.f32.mrf.mxu2  ;;  %vm1604_vm15 = vcmp.ne.s32.totalorder %v750_v39, %v1596_v35  ;;  %vm1609_vm0 = vcmp.ne.s32.totalorder %v751_v40, %v1599_v36  ;;  %vm1647_vm4 = vcmp.ne.s32.totalorder %v700_v59, %v1596_v35  ;;  %vm1652_vm5 = vcmp.ne.s32.totalorder %v701_v60, %v1599_v36 }
  0xa5   : > { %v438_v41 = vadd.f32 %v437_v37, %v410_v25  ;;  %vm756_vm1 = vmpackc.low %vm1609_vm0, %vm1604_vm15  ;;  %vm457_vm15 = vcmask 125952   ;;  %vm591_vm0 = vcmask 924672   ;;  %vm1728_vm2 = vcmp.ne.s32.totalorder %v708_v34, %v1599_v36 }
  0xa6   : > { %v1623_v61 = vpop.permute.xlu0 %588  ;;  %vm706_vm7 = vmpackc.low %vm1652_vm5, %vm1647_vm4  ;;  %v505_v56 = vpop.permute.xlu1 %504 }
  0xa7   : > { %v442_v42 = vmax.f32 %v438_v41, 0.0  ;;  %v590_v8 = vrot.slane %v1623_v61, 4  ;;  %v506_v60 = vrot.slane %v505_v56, 4 }
  0xa8   : > { %v374_v43 = vpop.f32.mrf.mxu0  ;;  %v388_v44 = vpop.f32.mrf.mxu1 }
  0xa9   : > { %v375_v46 = vadd.f32 %v374_v43, %v342_v26  ;;  %v389_v47 = vadd.f32 %v388_v44, %v342_v26  ;;  %v444_v50 = vpack.c.bf16 %v442_v42, %v442_v42  ;;  %v600_v16 = vunpack.c.l.b16 %v590_v8 }
  0xaa   : > { %v601_v17 = vunpack.c.h.b16 %v590_v8  ;;  %v592_v37 = vsel %vm591_vm0, %v590_v8, %v1623_v61  ;;  %v757_v42 = vunpack.c.l.b16 %v1591_v33  ;;  %v758_v43 = vunpack.c.h.b16 %v1591_v33 }
  0xab   : > { %v393_v51 = vmax.f32 %v375_v46, 0.0  ;;  %v394_v52 = vmax.f32 %v389_v47, 0.0  ;;  %448 = vrot.lane.b32.xlu2 %v444_v50, %s1441_s12  ;;  %vm604_vm8 = vcmp.ne.s32.totalorder %v600_v16, %v1596_v35  ;;  %v593_v44 = vunpack.c.l.b16 %v592_v37 }
  0xac   : > { %v439_v54 = vpop.f32.mrf.mxu2  ;;  %vm605_vm9 = vcmp.ne.s32.totalorder %v601_v17, %v1599_v36  ;;  %v594_v45 = vunpack.c.h.b16 %v592_v37  ;;  %vm1755_vm4 = vcmp.ne.s32.totalorder %v757_v42, %v1596_v35  ;;  %vm1760_vm5 = vcmp.ne.s32.totalorder %v758_v43, %v1599_v36 }
  0xad   : > { %v1620_v55 = vpack.c.bf16 %v394_v52, %v393_v51  ;;  %v440_v58 = vadd.f32 %v439_v54, %v415_v27  ;;  %vm606_vm10 = vmpackc.low %vm605_vm9, %vm604_vm8  ;;  %vm1775_vm8 = vcmp.ne.s32.totalorder %v645_v48, %v1596_v35  ;;  %vm1780_vm9 = vcmp.ne.s32.totalorder %v646_v49, %v1599_v36 }
  0xae   : > { %v508_v61 = vsel %vm2000_vm13, %v506_v60, %v505_v56  ;;  %v516_v8 = vunpack.c.l.b16 %v506_v60  ;;  %v517_v9 = vunpack.c.h.b16 %v506_v60 }
  0xaf   : > { %399 = vst [vmem:[#allocation2 + $0x4] sm:$0xff] %v1620_v55  ;;  %800 = vrot.lane.b32.xlu0 %v1620_v55, %s1441_s12  ;;  %v764_v62 = vsel %vm756_vm1, %v1620_v55, 0  ;;  %v443_v63 = vmax.f32 %v440_v58, 0.0  ;;  %v714_v19 = vsel %vm706_vm7, %v1620_v55, 0 }
  0xb0   : > { %v376_v0 = vpop.f32.mrf.mxu0  ;;  %v390_v1 = vpop.f32.mrf.mxu1  ;;  %772 = vrot.lane.b32.xlu1 %v764_v62, %s1439_s30  ;;  %690 = vst [vmem:[#allocation3 + $0x40] sm:$0xff] %v1620_v55 }
  0xb1   : > { %v377_v2 = vadd.f32 %v376_v0, %v347_v28  ;;  %v391_v3 = vadd.f32 %v390_v1, %v347_v28  ;;  %v445_v7 = vpack.c.bf16 %v443_v63, %v443_v63  ;;  %v509_v63 = vunpack.c.l.b16 %v508_v61 }
  0xb2   : > { %v510_v0 = vunpack.c.h.b16 %v508_v61 }
  0xb3   : > { %v395_v11 = vmax.f32 %v377_v2, 0.0  ;;  %v396_v12 = vmax.f32 %v391_v3, 0.0  ;;  %450 = vrot.lane.b32.xlu2 %v445_v7, %s1441_s12  ;;  %vm1824_vm14 = vcmp.ne.s32.totalorder %v509_v63, %v1596_v35 }
  0xb4   : > { %vm1829_vm13 = vcmp.ne.s32.totalorder %v510_v0, %v1599_v36 }
  0xb5   : > { %v1661_v13 = vpack.c.bf16 %v396_v12, %v395_v11 }
  0xb6   : > { %v637_v14 = vld [vmem:[#allocation2 + $0x8] sm:$0xf] }
  0xb7   : > { %v554_v15 = vld [vmem:[#allocation2 + $0x8] sm:$0xf]  ;;  %400 = vst [vmem:[#allocation2 + $0x18] sm:$0xff] %v1661_v13  ;;  %v660_v18 = vsel %vm658_vm6, %v637_v14, 0  ;;  %v766_v20 = vsel %vm756_vm1, %v1661_v13, 0  ;;  %v716_v21 = vsel %vm706_vm7, %v1661_v13, 0  ;;  %vm1723_vm1 = vcmp.ne.s32.totalorder %v707_v31, %v1596_v35 }
  0xb8   : > { %563 = vrot.lane.b32.xlu0 %v554_v15, %s1442_s13  ;;  %669 = vrot.lane.b32.xlu1 %v660_v18, %s1436_s19  ;;  %691 = vst [vmem:[#allocation3 + $0x48] sm:$0xff] %v1661_v13  ;;  %v583_v22 = vld [vmem:[#allocation2 + $0x8] sm:$0xf]  ;;  %vm713_vm3 = vmpackc.low %vm1728_vm2, %vm1723_vm1  ;;  %vm1770_vm7 = vcmp.ne.s32.totalorder %v594_v45, %v1599_v36  ;;  %vm545_vm2 = vcmask 138240  }
  0xb9   : > { %v608_v23 = vsel %vm606_vm10, %v583_v22, 0  ;;  %vm515_vm1 = vmpackc.low %vm1829_vm13, %vm1824_vm14  ;;  %v828_v15 = vsel %vm545_vm2, %v827_v10, %v1710_v29  ;;  %v499_v16 = vld [vmem:[#allocation2 + $0x8] sm:$0xf]  ;;  %v837_v22 = vunpack.c.h.b16 %v827_v10 }
  0xba   : > { %v829_v17 = vunpack.c.l.b16 %v828_v15  ;;  %v830_v18 = vunpack.c.h.b16 %v828_v15 }
  0xbb   : > { %722 = vrot.lane.b32.xlu2 %v714_v19, %s1435_s18  ;;  %vm841_vm14 = vcmp.ne.s32.totalorder %v837_v22, %v1599_v36 }
  0xbe   : > { %v639_v24 = vld [vmem:[#allocation2 + $0x1c] sm:$0xf] }
  0xbf   : > { %v585_v25 = vld [vmem:[#allocation2 + $0x1c] sm:$0xf]  ;;  %v662_v26 = vsel %vm658_vm6, %v639_v24, 0  ;;  %vm1765_vm6 = vcmp.ne.s32.totalorder %v593_v44, %v1596_v35 }
  0xc0   : > { %776 = vrot.lane.b32.xlu0 %v766_v20, %s1439_s30  ;;  %726 = vrot.lane.b32.xlu1 %v716_v21, %s1435_s18  ;;  %v610_v27 = vsel %vm606_vm10, %v585_v25, 0  ;;  %v556_v28 = vld [vmem:[#allocation2 + $0x1c] sm:$0xf]  ;;  %vm763_vm10 = vmpackc.low %vm1760_vm5, %vm1755_vm4  ;;  %v836_v21 = vunpack.c.l.b16 %v827_v10  ;;  %vm1869_vm5 = vcmp.ne.s32.totalorder %v829_v17, %v1596_v35 }
  0xc1   : > { %v501_v19 = vld [vmem:[#allocation2 + $0x1c] sm:$0xf] }
  0xc2   : > { %vm840_vm13 = vcmp.ne.s32.totalorder %v836_v21, %v1596_v35 }
  0xc3   : > { %617 = vrot.lane.b32.xlu2 %v608_v23, %s1437_s20 }
  0xc8   : > { %673 = vrot.lane.b32.xlu0 %v662_v26, %s1436_s19  ;;  %621 = vrot.lane.b32.xlu1 %v610_v27, %s1437_s20 }
  0xcb   : > { %804 = vrot.lane.b32.xlu2 %v1661_v13, %s1441_s12 }
  0xd3   : > { %567 = vrot.lane.b32.xlu2 %v556_v28, %s1442_s13 }
 0x105   : > { %v449_v30 = vpop.permute.xlu2 %448 }
 0x106   : > { %455 = vst.msk [vmem:[#allocation2] sm:$0xf] %vm454_vm11, %v449_v30 }
 0x107   : > { %458 = vst.msk [vmem:[#allocation2 + $0xc] sm:$0xf] %vm457_vm15, %v449_v30 }
 0x108   : > { %463 = vst.msk [vmem:[#allocation2] sm:$0xf] %vm454_vm11, %v1434_v4 }
 0x109   : > { %465 = vst.msk [vmem:[#allocation2 + $0xc] sm:$0xf] %vm457_vm15, %v1434_v4 }
 0x10d   : > { %v451_v38 = vpop.permute.xlu2 %450 }
 0x10e   : > { %456 = vst.msk [vmem:[#allocation2 + $0x14] sm:$0xf] %vm454_vm11, %v451_v38 }
 0x10f   : > { %459 = vst.msk [vmem:[#allocation2 + $0x20] sm:$0xf] %vm457_vm15, %v451_v38  ;;  %v553_v41 = vld [vmem:[#allocation2] sm:$0xff] }
 0x110   : > { %464 = vst.msk [vmem:[#allocation2 + $0x14] sm:$0xf] %vm454_vm11, %v1434_v4  ;;  %v793_v46 = vld [vmem:[#allocation2 + $0xc] sm:$0xf]  ;;  %561 = vrot.lane.b32.xlu2 %v553_v41, %s1442_s13  ;;  %vm599_vm11 = vmpackc.low %vm1770_vm7, %vm1765_vm6  ;;  %v523_v14 = vsel %vm515_vm1, %v553_v41, 0  ;;  %vm543_vm6 = vcmask 1043456  }
 0x111   : > { %v693_v47 = vld [vmem:[#allocation2 + $0xc] sm:$0xf]  ;;  %466 = vst.msk [vmem:[#allocation2 + $0x20] sm:$0xf] %vm457_vm15, %v1434_v4  ;;  %802 = vrot.lane.b32.xlu1 %v793_v46, %s1441_s12  ;;  %v607_v58 = vsel %vm599_vm11, %v553_v41, 0  ;;  %vm651_vm15 = vmpackc.low %vm1780_vm9, %vm1775_vm8  ;;  %vm521_vm8 = vcmp.ne.s32.totalorder %v517_v9, %v1599_v36  ;;  %vm1874_vm9 = vcmp.ne.s32.totalorder %v830_v18, %v1599_v36  ;;  %vm574_vm7 = vcmask 130048  }
 0x112   : > { %v715_v33 = vsel %vm713_vm3, %v693_v47, 0  ;;  %v743_v52 = vld [vmem:[#allocation2 + $0xc] sm:$0xf]  ;;  %v659_v59 = vsel %vm651_vm15, %v553_v41, 0 }
 0x113   : > { %724 = vrot.lane.b32.xlu0 %v715_v33, %s1435_s18  ;;  %v765_v57 = vsel %vm763_vm10, %v743_v52, 0  ;;  %v822_v27 = vld [vmem:[#allocation2 + $0xc] sm:$0xf] }
 0x115   : > { %v723_v34 = vpop.permute.xlu2 %722 }
 0x117   : > { %v555_v3 = vld [vmem:[#allocation2 + $0x14] sm:$0xff] }
 0x118   : > { %774 = vrot.lane.b32.xlu2 %v765_v57, %s1439_s30  ;;  %v695_v62 = vld [vmem:[#allocation2 + $0x20] sm:$0xf]  ;;  %v661_v11 = vsel %vm651_vm15, %v555_v3, 0  ;;  %v525_v20 = vsel %vm515_vm1, %v555_v3, 0  ;;  %vm842_vm15 = vmpackc.low %vm841_vm14, %vm840_vm13  ;;  %vm2043_vm1 = vcmask 7168  }
 0x119   : > { %615 = vrot.lane.b32.xlu1 %v607_v58, %s1437_s20  ;;  %v717_v1 = vsel %vm713_vm3, %v695_v62, 0  ;;  %v795_v2 = vld [vmem:[#allocation2 + $0x20] sm:$0xf]  ;;  %vm520_vm3 = vcmp.ne.s32.totalorder %v516_v8, %v1596_v35  ;;  %v844_v28 = vsel %vm842_vm15, %v822_v27, 0  ;;  %v609_v35 = vsel %vm599_vm11, %v555_v3, 0 }
 0x11a   : > { %v745_v7 = vld [vmem:[#allocation2 + $0x20] sm:$0xf]  ;;  %vm522_vm4 = vmpackc.low %vm521_vm8, %vm520_vm3  ;;  %vm813_vm11 = vcmask 916480   ;;  %vm2044_vm3 = vcmask 121856  }
 0x11b   : > { %667 = vrot.lane.b32.xlu0 %v659_v59, %s1436_s19  ;;  %v767_v12 = vsel %vm763_vm10, %v745_v7, 0  ;;  %v524_v23 = vsel %vm522_vm4, %v499_v16, 0  ;;  %v526_v24 = vsel %vm522_vm4, %v501_v19, 0  ;;  %vm835_vm10 = vmpackc.low %vm1874_vm9, %vm1869_vm5  ;;  %v824_v36 = vld [vmem:[#allocation2 + $0x20] sm:$0xf] }
 0x11c   : > { %v843_v29 = vsel %vm835_vm10, %v1620_v55, 0  ;;  %v846_v30 = vsel %vm842_vm15, %v824_v36, 0  ;;  %v845_v31 = vsel %vm835_vm10, %v1661_v13, 0  ;;  %vm2045_vm8 = vmmov %vm2043_vm1 }
 0x11d   : > { %v618_v55 = vpop.permute.xlu2 %617 }
 0x120   : > { %728 = vrot.lane.b32.xlu2 %v717_v1, %s1435_s18  ;;  %s1284_s18 = sshll.u32 %s1423_s24, 4  ;;  %s1053_s24 = scalar_lea.sflag [#allocation5], %s288_s11 }
 0x121   : > { %565 = vrot.lane.b32.xlu1 %v555_v3, %s1442_s13  ;;  %v801_v39 = vpop.permute.xlu0 %800 }
 0x122   : > { %v773_v38 = vpop.permute.xlu1 %772  ;;  %v808_v63 = vrot.slane %v801_v39, 4 }
 0x123   : > { %806 = vrot.lane.b32.xlu0 %v795_v2, %s1441_s12  ;;  %v780_v33 = vrot.slane %v773_v38, 4  ;;  %v730_v2 = vrot.slane %v723_v34, 4 }
 0x125   : > { %v1896_v37 = vpop.permute.xlu2 %804 }
 0x126   : > { %v810_v26 = vrot.slane %v1896_v37, 4 }
 0x128   : > { %671 = vrot.lane.b32.xlu2 %v661_v11, %s1436_s19 }
 0x129   : > { %778 = vrot.lane.b32.xlu1 %v767_v12, %s1439_s30  ;;  %v624_v12 = vrot.slane %v618_v55, 4  ;;  %s1068_s30 = sshll.u32 %s1545_s28, 4  ;;  %s1069_s30 = int_to_ptr.vmem [resolvable:$true] %s1068_s30 }
 0x12a   : > { %v670_v41 = vpop.permute.xlu1 %669  ;;  %v564_v42 = vpop.permute.xlu0 %563 }
 0x12b   : > { %531 = vrot.lane.b32.xlu0 %v523_v14, %s1438_s27  ;;  %v570_v43 = vrot.slane %v564_v42, 4  ;;  %v676_v16 = vrot.slane %v670_v41, 4 }
 0x12d   : > { %v1898_v40 = vpop.permute.xlu2 %567 }
 0x130   : > { %535 = vrot.lane.b32.xlu2 %v525_v20, %s1438_s27 }
 0x131   : > { %533 = vrot.lane.b32.xlu1 %v524_v23, %s1438_s27  ;;  %v572_v23 = vrot.slane %v1898_v40, 4 }
 0x132   : > { %v727_v47 = vpop.permute.xlu1 %726  ;;  %v1902_v48 = vpop.permute.xlu0 %776 }
 0x133   : > { %537 = vrot.lane.b32.xlu0 %v526_v24, %s1438_s27  ;;  %v732_v52 = vrot.slane %v727_v47, 4  ;;  %s1066_s27 = scalar_lea.hbm %s1997_s6, %s1284_s18 }
 0x138   : > { %853 = vrot.lane.b32.xlu2 %v844_v28, %s1440_s8 }
 0x139   : > { %851 = vrot.lane.b32.xlu1 %v843_v29, %s1440_s8 }
 0x13a   : > { %v1906_v53 = vpop.permute.xlu1 %621  ;;  %v674_v56 = vpop.permute.xlu0 %673 }
 0x13b   : > { %619 = vrot.lane.b32.xlu0 %v609_v35, %s1437_s20  ;;  %v678_v60 = vrot.slane %v674_v56, 4 }
 0x141   : > { %857 = vrot.lane.b32.xlu1 %v846_v30, %s1440_s8 }
 0x143   : > { %855 = vrot.lane.b32.xlu0 %v845_v31, %s1440_s8  ;;  %v782_v31 = vrot.slane %v1902_v48, 4  ;;  %s1070_s8 = sshll.u32 %s1066_s27, 4  ;;  %s1071_s8 = int_to_ptr.hbm [resolvable:$true] %s1070_s8 }
 0x144   : > { %s1367_s12 = sshra.s32 %s1071_s8, 4  ;;  %s1368_s12 = int_to_ptr.hbm [resolvable:$true] %s1367_s12 }
 0x145   : > { %s1369_s13 = scalar_lea.hbm %s1368_s12, 16  ;;  %p1374_p2 = scmp.lt.s32.totalorder %s1368_s12, %s1997_s6 }
 0x146   : > { %p1370_p13 = scmp.ne.s32.totalorder %s1368_s12, %s1369_s13  ;;  %p1375_p3 = scmp.lt.s32.totalorder %s1373_s16, %s1369_s13 }
 0x148   : > { %p1371_p0 = pnand %p1370_p13, %p1518_p4  ;;  %p1376_p5 = por %p1375_p3, %p1374_p2 }
 0x14a   : > { %p1372_p1 = pneg %p1371_p0 }
 0x14c   : > { %p1377_p6 = pnand %p1376_p5, %p1372_p1 }
 0x16a   : > { %v562_v44 = vpop.permute.xlu2 %561 }
 0x16b   : > { %v569_v45 = vrot.slane %v562_v44, 4 }
 0x16d   : > { %v573_v46 = vsel %vm543_vm6, %v569_v45, %v570_v43 }
 0x16e   : > { %v575_v13 = vsel %vm574_vm7, %v562_v44, %v573_v46 }
 0x16f   : > { %580 = vst [vmem:[#allocation3 + $0x10] sm:$0xff] %v575_v13 }
 0x172   : > { %v775_v49 = vpop.permute.xlu2 %774 }
 0x173   : > { %v781_v50 = vrot.slane %v775_v49, 4 }
 0x175   : > { %v784_v32 = vsel %vm543_vm6, %v780_v33, %v781_v50 }
 0x176   : > { %v785_v4 = vsel %vm591_vm0, %v773_v38, %v784_v32 }
 0x177   : > { %790 = vst [vmem:[#allocation3 + $0x60] sm:$0xff] %v785_v4 }
 0x17a   : > { %v729_v51 = vpop.permute.xlu2 %728 }
 0x17b   : > { %v733_v54 = vrot.slane %v729_v51, 4 }
 0x17d   : > { %v736_v57 = vsel %vm543_vm6, %v732_v52, %v733_v54 }
 0x17e   : > { %v737_v58 = vsel %vm643_vm12, %v727_v47, %v736_v57  ;;  %v1233_v4 = vld [vmem:[#allocation3 + $0x60] sm:$0xf]  ;;  %v1278_v51 = vld [vmem:[#allocation3 + $0x64] sm:$0xf]  ;;  %v890_v57 = vld [vmem:[%s1996_s5] sm:$0xff] }
 0x17f   : > { %741 = vst [vmem:[#allocation3 + $0x58] sm:$0xff] %v737_v58  ;;  %893 = vperm.xlu2 %1352, %v890_v57  }
 0x182   : > { %v672_v59 = vpop.permute.xlu2 %671 }
 0x183   : > { %v803_v61 = vpop.permute.xlu1 %802  ;;  %v677_v62 = vrot.slane %v672_v59, 4 }
 0x184   : > { %v809_v0 = vrot.slane %v803_v61, 4 }
 0x185   : > { %v725_v1 = vpop.permute.xlu0 %724  ;;  %v682_v3 = vsel %vm543_vm6, %v677_v62, %v678_v60 }
 0x186   : > { %v731_v5 = vrot.slane %v725_v1, 4  ;;  %v812_v6 = vsel %vm543_vm6, %v808_v63, %v809_v0  ;;  %v683_v7 = vsel %vm2043_vm1, %v672_v59, %v682_v3  ;;  %v1277_v1 = vld [vmem:[#allocation3 + $0x54] sm:$0xf0] }
 0x187   : > { %v814_v8 = vsel %vm813_vm11, %v801_v39, %v812_v6  ;;  %687 = vst [vmem:[#allocation3 + $0x38] sm:$0xff] %v683_v7 }
 0x188   : > { %v734_v9 = vsel %vm543_vm6, %v730_v2, %v731_v5  ;;  %819 = vst [vmem:[#allocation3 + $0x70] sm:$0xff] %v814_v8  ;;  %v1227_v2 = vld [vmem:[#allocation3 + $0x58] sm:$0xf0] }
 0x189   : > { %v735_v10 = vsel %vm643_vm12, %v723_v34, %v734_v9  ;;  %v1217_v9 = vld [vmem:[#allocation3 + $0x40] sm:$0xf]  ;;  %vm2046_vm12 = vcmask 908288  }
 0x18a   : > { %740 = vst [vmem:[#allocation3 + $0x50] sm:$0xff] %v735_v10  ;;  %v536_v39 = vpop.permute.xlu2 %535  ;;  %v1275_v10 = vld [vmem:[#allocation3 + $0x44] sm:$0xf0] }
 0x18b   : > { %v616_v11 = vpop.permute.xlu1 %615  ;;  %v541_v33 = vrot.slane %v536_v39, 4 }
 0x18c   : > { %v623_v14 = vrot.slane %v616_v11, 4 }
 0x18d   : > { %v668_v15 = vpop.permute.xlu0 %667 }
 0x18e   : > { %v675_v17 = vrot.slane %v668_v15, 4  ;;  %v627_v18 = vsel %vm543_vm6, %v623_v14, %v624_v12  ;;  %v1274_v14 = vld [vmem:[#allocation3 + $0x44] sm:$0xf] }
 0x18f   : > { %v629_v19 = vsel %vm2044_vm3, %v616_v11, %v627_v18  ;;  %v1241_v41 = vld [vmem:[#allocation3 + $0x70] sm:$0xf]  ;;  %v1280_v42 = vld [vmem:[#allocation3 + $0x74] sm:$0xf]  ;;  %v626_v11 = vrot.slane %v1906_v53, 4 }
 0x190   : > { %v679_v20 = vsel %vm543_vm6, %v675_v17, %v676_v16  ;;  %634 = vst [vmem:[#allocation3 + $0x20] sm:$0xff] %v629_v19 }
 0x191   : > { %v681_v21 = vsel %vm2045_vm8, %v668_v15, %v679_v20  ;;  %v1225_v62 = vld [vmem:[#allocation3 + $0x50] sm:$0xf]  ;;  %v1276_v63 = vld [vmem:[#allocation3 + $0x54] sm:$0xf]  ;;  %v1219_v15 = vld [vmem:[#allocation3 + $0x48] sm:$0xf0]  ;;  %v1218_v20 = vor.u32 %v1275_v10, %v1217_v9 }
 0x192   : > { %686 = vst [vmem:[#allocation3 + $0x30] sm:$0xff] %v681_v21  ;;  %v854_v61 = vpop.permute.xlu2 %853  ;;  %v1226_v7 = vor.u32 %v1277_v1, %v1225_v62  ;;  %v1230_v8 = vor.u32 %v1276_v63, %v1227_v2  ;;  %v1222_v21 = vor.u32 %v1274_v14, %v1219_v15 }
 0x193   : > { %v566_v22 = vpop.permute.xlu1 %565  ;;  %v860_v3 = vrot.slane %v854_v61, 4 }
 0x194   : > { %v571_v24 = vrot.slane %v566_v22, 4 }
 0x195   : > { %v807_v25 = vpop.permute.xlu0 %806 }
 0x196   : > { %v811_v27 = vrot.slane %v807_v25, 4  ;;  %v576_v28 = vsel %vm543_vm6, %v571_v24, %v572_v23  ;;  %v1273_v24 = vld [vmem:[#allocation3 + $0x34] sm:$0xf0]  ;;  %v1211_v25 = vld [vmem:[#allocation3 + $0x38] sm:$0xf0] }
 0x197   : > { %v577_v29 = vsel %vm574_vm7, %v566_v22, %v576_v28 }
 0x198   : > { %v815_v35 = vsel %vm543_vm6, %v810_v26, %v811_v27  ;;  %581 = vst [vmem:[#allocation3 + $0x18] sm:$0xff] %v577_v29 }
 0x199   : > { %v816_v36 = vsel %vm813_vm11, %v1896_v37, %v815_v35  ;;  %v1209_v22 = vld [vmem:[#allocation3 + $0x30] sm:$0xf]  ;;  %v1272_v23 = vld [vmem:[#allocation3 + $0x34] sm:$0xf] }
 0x19a   : > { %820 = vst [vmem:[#allocation3 + $0x78] sm:$0xff] %v816_v36  ;;  %v1210_v28 = vor.u32 %v1273_v24, %v1209_v22  ;;  %v1214_v29 = vor.u32 %v1272_v23, %v1211_v25 }
 0x19b   : > { %v779_v30 = vpop.permute.xlu1 %778 }
 0x19c   : > { %v783_v34 = vrot.slane %v779_v30, 4  ;;  %v1201_v30 = vld [vmem:[#allocation3 + $0x20] sm:$0xf] }
 0x19d   : > { %v532_v55 = vpop.permute.xlu0 %531 }
 0x19e   : > { %v786_v38 = vsel %vm543_vm6, %v782_v31, %v783_v34  ;;  %v539_v13 = vrot.slane %v532_v55, 4 }
 0x19f   : > { %v787_v40 = vsel %vm591_vm0, %v1902_v48, %v786_v38  ;;  %vm2047_vm0 = vmmov %vm2044_vm3 }
 0x1a0   : > { %791 = vst [vmem:[#allocation3 + $0x68] sm:$0xff] %v787_v40 }
 0x1a1   : > { %v1281_v43 = vld [vmem:[#allocation3 + $0x74] sm:$0xf0]  ;;  %v1243_v44 = vld [vmem:[#allocation3 + $0x78] sm:$0xf0] }
 0x1a2   : > { %v1242_v45 = vor.u32 %v1281_v43, %v1241_v41  ;;  %v1246_v46 = vor.u32 %v1280_v42, %v1243_v44  ;;  %v1269_v41 = vld [vmem:[#allocation3 + $0x14] sm:$0xf0]  ;;  %v1195_v42 = vld [vmem:[#allocation3 + $0x18] sm:$0xf0]  ;;  %v871_v43 = vld [vmem:[%s1995_s4] sm:$0xff] }
 0x1a3   : > { %v534_v37 = vpop.permute.xlu1 %533  ;;  %v1193_v44 = vld [vmem:[#allocation3 + $0x10] sm:$0xf] }
 0x1a4   : > { %996 = vmatpush.bf16.msra.mxu3 %v1242_v45  ;;  %1022 = vmatpush.bf16.msrb.mxu1 %v1246_v46  ;;  %v540_v47 = vrot.slane %v534_v37, 4  ;;  %v1268_v45 = vld [vmem:[#allocation3 + $0x14] sm:$0xf]  ;;  %v1194_v46 = vor.u32 %v1269_v41, %v1193_v44 }
 0x1a5   : > { %v538_v49 = vpop.permute.xlu0 %537  ;;  %v1198_v37 = vor.u32 %v1268_v45, %v1195_v42 }
 0x1a6   : > { %v542_v50 = vrot.slane %v538_v49, 4  ;;  %v544_v32 = vsel %vm543_vm6, %v539_v13, %v540_v47  ;;  %v897_v49 = vunpack.c.l.b16 %v871_v43 }
 0x1a7   : > { %v546_v48 = vsel %vm545_vm2, %v532_v55, %v544_v32  ;;  %v1279_v54 = vld [vmem:[#allocation3 + $0x64] sm:$0xf0]  ;;  %v1235_v56 = vld [vmem:[#allocation3 + $0x68] sm:$0xf0]  ;;  %v1270_v55 = vld [vmem:[#allocation3 + $0x24] sm:$0xf] }
 0x1a8   : > { %v547_v52 = vsel %vm543_vm6, %v541_v33, %v542_v50  ;;  %551 = vst [vmem:[#allocation3] sm:$0xff] %v546_v48  ;;  %v1234_v59 = vor.u32 %v1279_v54, %v1233_v4  ;;  %v1238_v60 = vor.u32 %v1278_v51, %v1235_v56  ;;  %v898_v33 = vunpack.c.h.b16 %v871_v43 }
 0x1a9   : > { %v548_v58 = vsel %vm545_vm2, %v536_v39, %v547_v52  ;;  %vm2048_vm2 = vmmov %vm2046_vm12 }
 0x1aa   : > { %552 = vst [vmem:[#allocation3 + $0x8] sm:$0xff] %v548_v58  ;;  %997 = vmatpush.bf16.msra.mxu3 %v1234_v59  ;;  %1023 = vmatpush.bf16.msrb.mxu1 %v1238_v60  ;;  %v899_v59 = vpack.c.b16 %v897_v49, %v897_v49  ;;  %v900_v60 = vpack.c.b16 %v898_v33, %v898_v33 }
 0x1ab   : > { %v852_v0 = vpop.permute.xlu1 %851 }
 0x1ac   : > { %v859_v5 = vrot.slane %v852_v0, 4 }
 0x1ad   : > { %v620_v6 = vpop.permute.xlu0 %619 }
 0x1ae   : > { %v625_v12 = vrot.slane %v620_v6, 4  ;;  %v863_v16 = vsel %vm543_vm6, %v859_v5, %v860_v3  ;;  %998 = vmatpush.bf16.msra.mxu3 %v1226_v7  ;;  %1024 = vmatpush.bf16.msrb.mxu1 %v1230_v8 }
 0x1af   : > { %v864_v17 = vsel %vm2046_vm12, %v852_v0, %v863_v16  ;;  %v1185_v13 = vld [vmem:[#allocation3] sm:$0xf]  ;;  %v1266_v32 = vld [vmem:[#allocation3 + $0x4] sm:$0xf] }
 0x1b0   : > { %v630_v18 = vsel %vm543_vm6, %v625_v12, %v626_v11  ;;  %869 = vst [vmem:[#allocation3 + $0x80] sm:$0xff] %v864_v17 }
 0x1b1   : > { %v631_v19 = vsel %vm2047_vm0, %v620_v6, %v630_v18  ;;  %v1267_v47 = vld [vmem:[#allocation3 + $0x4] sm:$0xf0]  ;;  %v1187_v4 = vld [vmem:[#allocation3 + $0x8] sm:$0xf0] }
 0x1b2   : > { %635 = vst [vmem:[#allocation3 + $0x28] sm:$0xff] %v631_v19  ;;  %999 = vmatpush.bf16.msra.mxu3 %v1218_v20  ;;  %1025 = vmatpush.bf16.msrb.mxu1 %v1222_v21  ;;  %v1186_v54 = vor.u32 %v1267_v47, %v1185_v13  ;;  %v1190_v58 = vor.u32 %v1266_v32, %v1187_v4 }
 0x1b3   : > { %v858_v53 = vpop.permute.xlu1 %857 }
 0x1b4   : > { %v862_v26 = vrot.slane %v858_v53, 4 }
 0x1b5   : > { %v856_v27 = vpop.permute.xlu0 %855 }
 0x1b6   : > { %v861_v35 = vrot.slane %v856_v27, 4  ;;  %1000 = vmatpush.bf16.msra.mxu3 %v1210_v28  ;;  %1026 = vmatpush.bf16.msrb.mxu1 %v1214_v29 }
 0x1b7   : > { %v1249_v50 = vld [vmem:[#allocation3 + $0x80] sm:$0xf]  ;;  %v1282_v48 = vld [vmem:[#allocation3 + $0x84] sm:$0xf] }
 0x1b8   : > { %v865_v36 = vsel %vm543_vm6, %v861_v35, %v862_v26 }
 0x1b9   : > { %v866_v31 = vsel %vm2048_vm2, %v856_v27, %v865_v36  ;;  %v1271_v34 = vld [vmem:[#allocation3 + $0x24] sm:$0xf0]  ;;  %v1203_v38 = vld [vmem:[#allocation3 + $0x28] sm:$0xf0] }
 0x1ba   : > { %870 = vst [vmem:[#allocation3 + $0x88] sm:$0xff] %v866_v31  ;;  %v1202_v39 = vor.u32 %v1271_v34, %v1201_v30  ;;  %v1206_v40 = vor.u32 %v1270_v55, %v1203_v38 }
 0x1bc   : > { %1001 = vmatpush.bf16.msra.mxu3 %v1202_v39  ;;  %1027 = vmatpush.bf16.msrb.mxu1 %v1206_v40 }
 0x1c0   : > { %1002 = vmatpush.bf16.msra.mxu3 %v1194_v46  ;;  %1028 = vmatpush.bf16.msrb.mxu1 %v1198_v37 }
 0x1c1   : > { %v1283_v51 = vld [vmem:[#allocation3 + $0x84] sm:$0xf0]  ;;  %v1251_v52 = vld [vmem:[#allocation3 + $0x88] sm:$0xf0] }
 0x1c2   : > { %v1250_v56 = vor.u32 %v1283_v51, %v1249_v50  ;;  %v1254_v57 = vor.u32 %v1282_v48, %v1251_v52 }
 0x1c4   : > { %1003 = vmatpush.bf16.msra.mxu3 %v1186_v54  ;;  %1016 = vmatpush.bf16.msrb.mxu0 %v1250_v56 }
 0x1c5   : > { %1029 = vmatpush.bf16.msrb.mxu1 %v1190_v58  ;;  %1042 = vmatpush.bf16.msrb.mxu2 %v1254_v57 }
 0x1c7   : > { %1004 = vmatmul.bf16.vlgmr.msra.gmra.mxu3 %v899_v59  ;;  %1255 = vmatmul.msk.bf16.vlgmr.msrb.gmra.mxu0 %vm574_vm7, %v900_v60 }
 0x1c8   : > { %1256 = vmatmul.msk.bf16.vlgmr.msrb.gmra.mxu2 %vm574_vm7, %v900_v60  ;;  %1030 = vmatmul.bf16.vlgmr.msrb.gmra.mxu1 %v899_v59 }
 0x1d9   : > { %v894_v63 = vpop.permute.xlu2 %893 }
 0x244   : > { %v1018_v61 = vpop.f32.mrf.mxu0 }
 0x245   : > { %v1031_v62 = vpop.f32.mrf.mxu1 }
 0x246   : > { %v1032_v0 = vadd.f32 %v1031_v62, %v894_v63 }
 0x24a   : > { %v1005_v1 = vpop.f32.mrf.mxu3 }
 0x24b   : > { %v1044_v2 = vpop.f32.mrf.mxu2  ;;  %v1006_v3 = vadd.f32 %v1005_v1, %v894_v63 }
 0x24c   : > { %v1045_v5 = vadd.f32 %v1044_v2, %v1032_v0  ;;  %v1020_v6 = vpop.f32.mrf.mxu0 }
 0x24d   : > { %v1019_v7 = vadd.f32 %v1018_v61, %v1006_v3  ;;  %v1033_v8 = vpop.f32.mrf.mxu1 }
 0x24e   : > { %v1049_v9 = vmax.f32 %v1045_v5, 0.0 }
 0x24f   : > { %v1048_v10 = vmax.f32 %v1019_v7, 0.0 }
 0x250   : > { %1051 = vst [vmem:[%s1545_s28 + $0x8] sm:$0xff] %v1049_v9 }
 0x251   : > { %1050 = vst [vmem:[%s1545_s28] sm:$0xff] %v1048_v10 }
 0x252   : > { %v1007_v11 = vpop.f32.mrf.mxu3 }
 0x253   : > { %1380 = shalt.err (!%p1377_p6)
}
 0x254   : > { %1285 = dma.vmem_to_hbm [thread:$0]  (%p1518_p4), %s1069_s30, 256, %s1071_s8, %s1053_s24   ;;  %v1046_v12 = vpop.f32.mrf.mxu2 }
 0x255 PF: > { %p1291_p7 = scmp.ge.s32.totalorder %s1431_s26, 2  ;;  %s1082_s11 = sand.u32 1, %s1411_s21  }
 0x256   : > { %s1083_s28 = scalar_lea.sflag [#allocation5], %s1082_s11 }
 0x257   : > { %p1288_p9 = pnand %p1291_p7, %p1525_p8 }
 0x259   : > { %p1289_p10 = pneg %p1288_p9 }
 0x25b   : > { %1406 = dma.done.wait (%p1289_p10), %s1083_s28, 256  }
 0x25c   : > { %1408 = vsyncadd (%p1289_p10), %s1083_s28, 4294967040  ;;  %s19_s26 = sadd.s32 1, %s1431_s26   ;;  %s2049_s21 = smov %s1415_s22 }
 0x25d   : > { %p16_p11 = scmp.ge.s32.totalorder %s19_s26, 4   ;;  %s2050_s22 = smov %s1419_s23 }
 0x25e   : > { %s2051_s23 = smov %s1531_s10  ;;  %s2052_s24 = smov %s1427_s25 }
 0x25f   : > { %s2053_s25 = smov %s2055_s29  ;;  %18 = sbr.rel (!%p16_p11) target bundleno = 4 (0x4), region = 90 }
 0x264   :  { %1089 = vsyncpa [#allocation5], 1 }
 0x265   :  { %1091 = vsyncpa [#allocation5 + $0x1], 1 }

</bundles_post_ra>
